<compile_context>
chip_gen: v5e
topology: v5e:2x2
jax: 0.10.0
libtpu: 0.0.40
codegen_flags: <defaults>
</compile_context>

<pallas_src>
import numpy as np
import jax
import jax.numpy as jnp
from jax.experimental import pallas as pl
from jax.experimental.pallas import tpu as pltpu


# ----------------------------------------------------------------------------
# Deterministic buffer construction (mirrors the PyTorch __init__ helpers)
# ----------------------------------------------------------------------------
def _hz_to_mel(f):
    return 2595.0 * np.log10(1.0 + f / 700.0)


def _get_mel_frequencies(n_mels, sample_rate):
    min_mel = _hz_to_mel(20.0)
    max_mel = _hz_to_mel(sample_rate / 2.0)
    mels = np.linspace(min_mel, max_mel, n_mels)
    return 700.0 * (10.0 ** (mels / 2595.0) - 1.0)


def create_harmonic_matrix(size, sample_rate, n_mels, is_mel_scale=True):
    matrix = np.zeros((size, size), dtype=np.float64)
    if is_mel_scale and n_mels > 0:
        freqs = _get_mel_frequencies(n_mels, sample_rate)
        consonance_scores = {1.0: 1.0, 0.667: 0.9, 0.75: 0.8, 0.8: 0.7,
                             0.833: 0.6, 0.889: 0.5, 0.944: 0.3}
        for i in range(len(freqs)):
            for j in range(len(freqs)):
                if i == j:
                    matrix[i, j] = 1.0
                else:
                    ratio = freqs[i] / freqs[j]
                    if ratio > 1.0:
                        ratio = 1.0 / ratio
                    consonance = 0.0
                    for target_ratio, weight in consonance_scores.items():
                        width = 0.01 if target_ratio == 1.0 else 0.02
                        consonance += weight * np.exp(-(ratio - target_ratio) ** 2 / width)
                    matrix[i, j] = consonance
    else:
        for i in range(size):
            for j in range(size):
                if i == j:
                    matrix[i, j] = 1.0
                else:
                    ratio = (i + 1) / (j + 1)
                    if ratio > 1.0:
                        ratio = 1.0 / ratio
                    consonance = 0.0
                    for consonant_ratio in [1.0, 0.667, 0.75, 0.8, 0.833]:
                        consonance += np.exp(-10.0 * (ratio - consonant_ratio) ** 2)
                    matrix[i, j] = consonance
    return (matrix / matrix.max()).astype(np.float32)


def create_masking_matrix(size, n_freqs):
    critical_bandwidth = max(1, int(n_freqs * 0.05))
    masking = np.zeros((size, size), dtype=np.float64)
    for i in range(size):
        for j in range(max(0, i - critical_bandwidth), min(size, i + critical_bandwidth + 1)):
            if j <= i:
                masking[i, j] = np.exp(-0.5 * ((j - i) / critical_bandwidth) ** 2)
            else:
                masking[i, j] = np.exp(-1.0 * ((j - i) / critical_bandwidth) ** 2)
    return (masking / masking.max()).astype(np.float32)


# ----------------------------------------------------------------------------
# Small helpers
# ----------------------------------------------------------------------------
def _round_up(n, m):
    return ((n + m - 1) // m) * m


def _cdiv(a, b):
    return (a + b - 1) // b


def _vmem_budget_bytes():
    """~80% of physical VMEM (generation-aware); conservative 64 MiB fallback."""
    try:
        cap = int(pltpu.get_tpu_info().vmem_capacity_bytes)
    except Exception:
        cap = 64 << 20          # v7x has 64 MiB per TensorCore; safe everywhere
    return int(cap * 0.8)


def _resident_spec(block_shape, index_map):
    """Single-buffer resident operands (constant / slowly-varying block index)."""
    try:
        return pl.BlockSpec(block_shape, index_map, pipeline_mode=pl.Buffered(1))
    except Exception:
        # Fall back to the default (double-buffered) spec if the installed JAX
        # doesn't accept Buffered(1); correctness is unaffected.
        return pl.BlockSpec(block_shape, index_map)


# ----------------------------------------------------------------------------
# Pallas kernel: one (f_out tile, batch tile) per grid step.
#   x_ref : (TB, Fin_p)     batch tile (streamed, f32 or bf16)
#   w_ref : (Fin_p, TFO)    W_eff = (I + hw*H) @ W^T column slice (resident)
#   b_ref : (1, TFO)        bias (f32, resident)
#   m_ref : (Fin_p, TFO)    masking-matrix column slice (resident)
#   o_ref : (TB, TFO)       output tile
# ----------------------------------------------------------------------------
def harmonic_layer_kernel(x_ref, w_ref, b_ref, m_ref, o_ref):
    x = x_ref[...]
    combined = jnp.dot(x, w_ref[...], preferred_element_type=jnp.float32) + b_ref[...]
    masking = jnp.dot(jnp.abs(x), m_ref[...], preferred_element_type=jnp.float32)
    o_ref[...] = (combined * (1.0 - 0.2 * masking)).astype(o_ref.dtype)


# ----------------------------------------------------------------------------
# Wrapper: caches the O(F^3) precompute + padded/cast parameter operands.
# ----------------------------------------------------------------------------
class HarmonicLayerPallas:
    def __init__(self, weight, bias, harmonic_matrix, masking_matrix,
                 harmonic_weight, *, use_bf16=True, out_dtype=jnp.float32):
        f_out, f_in = weight.shape
        assert harmonic_matrix.shape == (f_in, f_in)
        assert masking_matrix.shape == (f_in, f_in)
        # The final broadcasted multiply requires masking_effect (B, f_in) to
        # align with combined (B, f_out).
        assert f_out == f_in, "HarmonicLayer forward requires out_features == in_features"

        self.f_in, self.f_out = f_in, f_out
        self.matmul_dtype = jnp.bfloat16 if use_bf16 else jnp.float32
        self.out_dtype = out_dtype

        lane_out = 256 if f_out > 128 else 128     # v6e/v7x MXU is 2x256^2
        self.f_in_p = _round_up(f_in, 128)
        self.f_out_p = _round_up(f_out, lane_out)

        # ---- one-time algebraic precompute (cached, off the hot path) --------
        hw = jnp.asarray(harmonic_weight, jnp.float32)
        a = jnp.eye(f_in, dtype=jnp.float32) + hw * harmonic_matrix.astype(jnp.float32)
        # W_eff = (I + hw*H) @ W^T, transpose fused into the einsum.
        w_eff = jnp.einsum('ij,oj->io', a, weight.astype(jnp.float32))   # (f_in, f_out)

        pad_wm = ((0, self.f_in_p - f_in), (0, self.f_out_p - f_out))
        self.w_p = jnp.pad(w_eff, pad_wm).astype(self.matmul_dtype)
        self.m_p = jnp.pad(masking_matrix.astype(jnp.float32),
                           pad_wm).astype(self.matmul_dtype)
        self.b_p = jnp.pad(bias.astype(jnp.float32).reshape(1, f_out),
                           ((0, 0), (0, self.f_out_p - f_out)))

        self.vmem_budget = _vmem_budget_bytes()
        self.mm_bytes = jnp.dtype(self.matmul_dtype).itemsize

        # ---- F_out tiling: resident W/M column slice fits in ~half the budget,
        #      so each TensorCore only holds a column slice (v7x megacore). ----
        max_tfo = (self.vmem_budget // 2) // max(1, 2 * self.f_in_p * self.mm_bytes)
        self.tfo = min(self.f_out_p,
                       max(lane_out, (max_tfo // lane_out) * lane_out))

    def __call__(self, x):
        B, f_in = x.shape
        assert f_in == self.f_in
        f_in_p, f_out_p, tfo = self.f_in_p, self.f_out_p, self.tfo
        mm_bytes = self.mm_bytes
        out_bytes = jnp.dtype(self.out_dtype).itemsize

        # Batch padded only to a sublane multiple; last tile may be partial.
        b_p = _round_up(B, 8)

        # Batch tile: large in the memory-bound small-F regime.
        if f_in_p <= 512:
            target_tb = 2048
        elif f_in_p <= 1024:
            target_tb = 1024
        else:
            target_tb = 512
        tb = min(target_tb, b_p)

        resident = 2 * f_in_p * tfo * mm_bytes + tfo * 4        # single-buffered
        avail = max(self.vmem_budget - resident, 1 << 20)
        while tb > 8 and 2 * tb * (f_in_p * mm_bytes + tfo * out_bytes) > avail:
            tb = max(8, _round_up(tb // 2, 8))

        streaming = 2 * tb * (f_in_p * mm_bytes + tfo * out_bytes)
        vmem_limit = int(min(max(resident + streaming + (2 << 20), 32 << 20),
                             self.vmem_budget))

        # Pad / cast x only when needed (skip the HBM round-trip if aligned).
        x_c = x if x.dtype == self.matmul_dtype else x.astype(self.matmul_dtype)
        if (b_p, f_in_p) != (B, f_in):
            x_c = jnp.pad(x_c, ((0, b_p - B), (0, f_in_p - f_in)))

        nj = _cdiv(f_out_p, tfo)
        nb = _cdiv(b_p, tb)

        out_p = pl.pallas_call(
            harmonic_layer_kernel,
            out_shape=jax.ShapeDtypeStruct((b_p, f_out_p), self.out_dtype),
            grid=(nj, nb),
            in_specs=[
                pl.BlockSpec((tb, f_in_p), lambda j, i: (i, 0)),      # x (streamed)
                _resident_spec((f_in_p, tfo), lambda j, i: (0, j)),   # W_eff
                _resident_spec((1, tfo), lambda j, i: (0, j)),        # bias
                _resident_spec((f_in_p, tfo), lambda j, i: (0, j)),   # masking
            ],
            out_specs=pl.BlockSpec((tb, tfo), lambda j, i: (i, j)),
            compiler_params=pltpu.CompilerParams(
                dimension_semantics=("parallel", "parallel"),
                vmem_limit_bytes=vmem_limit,
            ),
        )(x_c, self.w_p, self.b_p, self.m_p)

        if (b_p, f_out_p) == (B, self.f_out):
            return out_p
        return out_p[:B, :self.f_out]


def harmonic_layer_forward(x, weight, bias, harmonic_matrix, masking_matrix,
                           harmonic_weight, *, use_bf16=True,
                           out_dtype=jnp.float32):
    """One-off convenience wrapper. For repeated calls with the same parameters,
    construct HarmonicLayerPallas once (caches the O(F^3) precompute)."""
    layer = HarmonicLayerPallas(weight, bias, harmonic_matrix, masking_matrix,
                                harmonic_weight, use_bf16=use_bf16,
                                out_dtype=out_dtype)
    return layer(x)


# Pure-JAX reference (same repaired semantics) for validation.
def harmonic_layer_ref(x, weight, bias, H, M, hw):
    linear_out = x @ weight.T + bias
    harmonic_influence = x @ (H @ weight.T)
    masking_effect = (jnp.abs(x) @ M) * 0.2
    combined = linear_out + hw * harmonic_influence
    return combined * (1.0 - masking_effect)


if __name__ == "__main__":
    # Small shapes: out_features == in_features == n_mels so all buffers line up.
    B = 8
    IN_FEATURES = 16
    OUT_FEATURES = 16
    N_MELS = 16
    SAMPLE_RATE = 22050
    HARMONIC_WEIGHT = 0.5

    key = jax.random.PRNGKey(0)
    kx, kw, kb = jax.random.split(key, 3)

    # Deterministic "nn.Linear"-style init (uniform in +-1/sqrt(in_features)).
    bound = 1.0 / np.sqrt(IN_FEATURES)
    weight = jax.random.uniform(kw, (OUT_FEATURES, IN_FEATURES), jnp.float32,
                                -bound, bound)
    bias = jax.random.uniform(kb, (OUT_FEATURES,), jnp.float32, -bound, bound)

    harmonic_matrix = jnp.asarray(
        create_harmonic_matrix(IN_FEATURES, SAMPLE_RATE, N_MELS, is_mel_scale=True))
    masking_matrix = jnp.asarray(create_masking_matrix(IN_FEATURES, N_MELS))

    x = jax.random.normal(kx, (B, IN_FEATURES), jnp.float32)

    ref = harmonic_layer_ref(x, weight, bias, harmonic_matrix, masking_matrix,
                             HARMONIC_WEIGHT)

    # f32 matmul path: tight tolerance.
    layer_f32 = HarmonicLayerPallas(weight, bias, harmonic_matrix, masking_matrix,
                                    HARMONIC_WEIGHT, use_bf16=False)
    out_f32 = jax.block_until_ready(layer_f32(x))
    np.testing.assert_allclose(np.asarray(out_f32), np.asarray(ref),
                               rtol=1e-5, atol=1e-5)

    # bf16 matmul default path (f32 accumulation): relaxed tolerance.
    layer_bf16 = HarmonicLayerPallas(weight, bias, harmonic_matrix, masking_matrix,
                                     HARMONIC_WEIGHT, use_bf16=True)
    out_bf16 = jax.block_until_ready(layer_bf16(x))
    np.testing.assert_allclose(np.asarray(out_bf16), np.asarray(ref),
                               rtol=3e-2, atol=3e-2)

    print("KERNEL_OK")
</pallas_src>

<mosaic_0001>
module attributes {stable_mosaic.version = 11 : i64} {
  func.func @harmonic_layer_kernel(%arg0: i32, %arg1: i32, %arg2: memref<8x128xf32, #tpu.memory_space<vmem>>, %arg3: memref<128x128xf32, #tpu.memory_space<vmem>>, %arg4: memref<1x128xf32, #tpu.memory_space<vmem>>, %arg5: memref<128x128xf32, #tpu.memory_space<vmem>>, %arg6: memref<8x128xf32, #tpu.memory_space<vmem>>) attributes {dimension_semantics = [#tpu.dimension_semantics<parallel>, #tpu.dimension_semantics<parallel>], iteration_bounds = array<i64: 1, 1>, scalar_prefetch = 0 : i64, scratch_operands = 0 : i64, tpu.core_type = #tpu.core_type<tc>, window_params = [{transform_indices = @transform_0, window_bounds = array<i64: 8, 128>}, {pipeline_mode = #tpu.pipeline_mode<synchronous>, transform_indices = @transform_1, window_bounds = array<i64: 128, 128>}, {pipeline_mode = #tpu.pipeline_mode<synchronous>, transform_indices = @transform_2, window_bounds = array<i64: 1, 128>}, {pipeline_mode = #tpu.pipeline_mode<synchronous>, transform_indices = @transform_3, window_bounds = array<i64: 128, 128>}, {transform_indices = @transform_4, window_bounds = array<i64: 8, 128>}]} {
    %c0 = arith.constant 0 : index
    %c0_0 = arith.constant 0 : index
    %0 = vector.load %arg2[%c0, %c0_0] : memref<8x128xf32, #tpu.memory_space<vmem>>, vector<8x128xf32>
    %c0_1 = arith.constant 0 : index
    %c0_2 = arith.constant 0 : index
    %1 = vector.load %arg3[%c0_1, %c0_2] : memref<128x128xf32, #tpu.memory_space<vmem>>, vector<128x128xf32>
    %cst = arith.constant dense<0.000000e+00> : vector<8x128xf32>
    %2 = tpu.matmul %0, %1, %cst {dimension_numbers = #tpu.dot_dimension_numbers<[1], [0], [0], [1], [0, 0, 1, 1], [], []>} : vector<8x128xf32>, vector<128x128xf32>, vector<8x128xf32> -> vector<8x128xf32>
    %c0_3 = arith.constant 0 : index
    %c0_4 = arith.constant 0 : index
    %3 = vector.load %arg4[%c0_3, %c0_4] : memref<1x128xf32, #tpu.memory_space<vmem>>, vector<1x128xf32>
    %4 = vector.broadcast %3 : vector<1x128xf32> to vector<8x128xf32>
    %5 = arith.addf %2, %4 : vector<8x128xf32>
    %6 = math.absf %0 : vector<8x128xf32>
    %c0_5 = arith.constant 0 : index
    %c0_6 = arith.constant 0 : index
    %7 = vector.load %arg5[%c0_5, %c0_6] : memref<128x128xf32, #tpu.memory_space<vmem>>, vector<128x128xf32>
    %cst_7 = arith.constant dense<0.000000e+00> : vector<8x128xf32>
    %8 = tpu.matmul %6, %7, %cst_7 {dimension_numbers = #tpu.dot_dimension_numbers<[1], [0], [0], [1], [0, 0, 1, 1], [], []>} : vector<8x128xf32>, vector<128x128xf32>, vector<8x128xf32> -> vector<8x128xf32>
    %cst_8 = arith.constant 2.000000e-01 : f32
    %9 = vector.broadcast %cst_8 : f32 to vector<8x128xf32>
    %10 = arith.mulf %9, %8 : vector<8x128xf32>
    %cst_9 = arith.constant 1.000000e+00 : f32
    %11 = vector.broadcast %cst_9 : f32 to vector<8x128xf32>
    %12 = arith.subf %11, %10 : vector<8x128xf32>
    %13 = arith.mulf %5, %12 : vector<8x128xf32>
    %c0_10 = arith.constant 0 : index
    %c0_11 = arith.constant 0 : index
    %14 = vector.load %arg6[%c0_10, %c0_11] : memref<8x128xf32, #tpu.memory_space<vmem>>, vector<8x128xf32>
    tpu.vector_store %arg6[%c0_10, %c0_11], %13 {strides = array<i32>} : memref<8x128xf32, #tpu.memory_space<vmem>>, vector<8x128xf32>,
    return
  }
  func.func @transform_0(%arg0: i32, %arg1: i32) -> (i32, i32) {
    %c0_i32 = arith.constant 0 : i32
    %c0_i32_0 = arith.constant 0 : i32
    return %arg1, %c0_i32 : i32, i32
  }
  func.func @transform_1(%arg0: i32, %arg1: i32) -> (i32, i32) {
    %c0_i32 = arith.constant 0 : i32
    %c0_i32_0 = arith.constant 0 : i32
    return %c0_i32, %arg0 : i32, i32
  }
  func.func @transform_2(%arg0: i32, %arg1: i32) -> (i32, i32) {
    %c0_i32 = arith.constant 0 : i32
    %c0_i32_0 = arith.constant 0 : i32
    return %c0_i32, %arg0 : i32, i32
  }
  func.func @transform_3(%arg0: i32, %arg1: i32) -> (i32, i32) {
    %c0_i32 = arith.constant 0 : i32
    %c0_i32_0 = arith.constant 0 : i32
    return %c0_i32, %arg0 : i32, i32
  }
  func.func @transform_4(%arg0: i32, %arg1: i32) -> (i32, i32) {
    %c0_i32 = arith.constant 0 : i32
    return %arg1, %arg0 : i32, i32
  }
}

</mosaic_0001>

<bundles_post_ra>
// kernel: tpu_custom_call.1
= control target key start
LH: loop header
LB: loop body
LE: loop exit
PB: predicated region body
PF: predicated region fallthrough
CT: control target
= control target key end

     0   :  { %9 = vsyncpa [#allocation3], 0  ;;  %s318_s0 = inlined_call_operand.hbm [shape: f32[8,128], index: 0, kind: input, shape index: {}]   ;;  %s319_s1 = inlined_call_operand.hbm [shape: f32[128,128], index: 1, kind: input, shape index: {}]   ;;  %s320_s2 = inlined_call_operand.vmem [shape: f32[1,128], index: 2, kind: input, shape index: {}]   ;;  %s321_s3 = inlined_call_operand.hbm [shape: f32[128,128], index: 3, kind: input, shape index: {}]   ;;  %s322_s4 = inlined_call_operand.hbm [shape: f32[8,128], index: 4, kind: output, shape index: {}]  }
   0x1   :  { %10 = vsyncpa [#allocation6], 0  ;;  %s27_s17 = sshll.u32 %s319_s1, 4  ;;  %s28_s17 = int_to_ptr.hbm [resolvable:$true] %s27_s17 }
   0x2   :  { %11 = vsyncpa [#allocation4], 0  ;;  %s272_s18 = smov [#allocation5]   ;;  %s17_s22 = sshll.u32 %s318_s0, 4  ;;  %s18_s22 = int_to_ptr.hbm [resolvable:$true] %s17_s22 }
   0x3   :  { %s29_s19 = sshll.u32 %s272_s18, 4  ;;  %s273_s23 = smov 128   ;;  %s30_s19 = int_to_ptr.vmem [resolvable:$true] %s29_s19 }
   0x4   :  { %s274_s24 = smov 8   ;;  %s275_s25 = smov [#allocation2]  }
   0x5   :  { %35 = dma.hbm_to_vmem [thread:$0]  %s28_s17, 2048, %s30_s19, [#allocation6], %s273_s23, %s273_s23, %s274_s24  }
   0x6   :  { %s19_s26 = sshll.u32 %s275_s25, 4  ;;  %s42_s29 = sshll.u32 %s321_s3, 4  ;;  %s20_s26 = int_to_ptr.vmem [resolvable:$true] %s19_s26  ;;  %s43_s29 = int_to_ptr.hbm [resolvable:$true] %s42_s29 }
   0x7   :  { %22 = dma.hbm_to_vmem [thread:$0]  %s18_s22, 128, %s20_s26, [#allocation3]  }
   0x8   :  { %s276_s1 = smov [#allocation7]  }
   0x9   :  { %s44_s30 = sshll.u32 %s276_s1, 4  ;;  %s45_s30 = int_to_ptr.vmem [resolvable:$true] %s44_s30 }
   0xa   :  { %50 = dma.hbm_to_vmem [thread:$0]  %s43_s29, 2048, %s45_s30, [#allocation6], %s273_s23, %s273_s23, %s274_s24  }
   0xb   :  { %266 = dma.done.wait [#allocation3], 128  }
   0xc   :  { %267 = vsyncadd [#allocation3], 4294967168 }
   0xd   :  { %268 = dma.done.wait [#allocation6], 4096  }
   0xe   :  { %269 = vsyncadd [#allocation6], 4294963200  ;;  %v120_v0 = vld [vmem:[#allocation7 + $0x78] sm:$0xff]  ;;  %v119_v2 = vld [vmem:[#allocation7 + $0x70] sm:$0xff]  ;;  %s277_s5 = smov [#allocation8]   ;;  %s152_s9 = sshll.u32 %s322_s4, 4  ;;  %s153_s9 = int_to_ptr.hbm [resolvable:$true] %s152_s9 }
   0xf   :  { %v79_v1 = vld [vmem:[#allocation5 + $0x78] sm:$0xff]  ;;  %121 = vmatpush.msra.mxu1 %v120_v0  ;;  %v78_v3 = vld [vmem:[#allocation5 + $0x70] sm:$0xff]  ;;  %v118_v4 = vld [vmem:[#allocation7 + $0x68] sm:$0xff]  ;;  %s150_s6 = sshll.u32 %s277_s5, 4  ;;  %s151_s6 = int_to_ptr.vmem [resolvable:$true] %s150_s6 }
  0x10   :  { %84 = vmatpush.msra.mxu0 %v79_v1  ;;  %v77_v5 = vld [vmem:[#allocation5 + $0x68] sm:$0xff]  ;;  %v117_v6 = vld [vmem:[#allocation7 + $0x60] sm:$0xff]  ;;  %v116_v8 = vld [vmem:[#allocation7 + $0x58] sm:$0xff] }
  0x11   :  { %122 = vmatpush.msra.mxu1 %v119_v2  ;;  %v76_v7 = vld [vmem:[#allocation5 + $0x60] sm:$0xff]  ;;  %v75_v9 = vld [vmem:[#allocation5 + $0x58] sm:$0xff]  ;;  %v115_v10 = vld [vmem:[#allocation7 + $0x50] sm:$0xff] }
  0x12   :  { %85 = vmatpush.msra.mxu0 %v78_v3  ;;  %v74_v11 = vld [vmem:[#allocation5 + $0x50] sm:$0xff]  ;;  %v114_v12 = vld [vmem:[#allocation7 + $0x48] sm:$0xff]  ;;  %v113_v14 = vld [vmem:[#allocation7 + $0x40] sm:$0xff] }
  0x13   :  { %123 = vmatpush.msra.mxu1 %v118_v4  ;;  %v73_v13 = vld [vmem:[#allocation5 + $0x48] sm:$0xff]  ;;  %v72_v15 = vld [vmem:[#allocation5 + $0x40] sm:$0xff]  ;;  %v112_v16 = vld [vmem:[#allocation7 + $0x38] sm:$0xff] }
  0x14   :  { %86 = vmatpush.msra.mxu0 %v77_v5  ;;  %v71_v17 = vld [vmem:[#allocation5 + $0x38] sm:$0xff]  ;;  %v111_v18 = vld [vmem:[#allocation7 + $0x30] sm:$0xff]  ;;  %v110_v20 = vld [vmem:[#allocation7 + $0x28] sm:$0xff] }
  0x15   :  { %124 = vmatpush.msra.mxu1 %v117_v6  ;;  %v70_v19 = vld [vmem:[#allocation5 + $0x30] sm:$0xff]  ;;  %v69_v21 = vld [vmem:[#allocation5 + $0x28] sm:$0xff]  ;;  %v109_v22 = vld [vmem:[#allocation7 + $0x20] sm:$0xff] }
  0x16   :  { %87 = vmatpush.msra.mxu0 %v76_v7  ;;  %v68_v23 = vld [vmem:[#allocation5 + $0x20] sm:$0xff]  ;;  %v108_v24 = vld [vmem:[#allocation7 + $0x18] sm:$0xff]  ;;  %v107_v26 = vld [vmem:[#allocation7 + $0x10] sm:$0xff] }
  0x17   :  { %125 = vmatpush.msra.mxu1 %v116_v8  ;;  %v67_v25 = vld [vmem:[#allocation5 + $0x18] sm:$0xff]  ;;  %v66_v27 = vld [vmem:[#allocation5 + $0x10] sm:$0xff]  ;;  %v106_v29 = vld [vmem:[#allocation7 + $0x8] sm:$0xff] }
  0x18   :  { %88 = vmatpush.msra.mxu0 %v75_v9  ;;  %v63_v28 = vld [vmem:[#allocation2] sm:$0xff]  ;;  %v65_v30 = vld [vmem:[#allocation5 + $0x8] sm:$0xff]  ;;  %v105_v31 = vld [vmem:[#allocation7] sm:$0xff] }
  0x19   :  { %126 = vmatpush.msra.mxu1 %v115_v10  ;;  %v104_v32 = vand.u32 2147483647, %v63_v28  ;;  %v64_v33 = vld [vmem:[#allocation5] sm:$0xff]  ;;  %v169_v34 = vld [vmem:[%s320_s2] ss:$0 sm:$0xff] }
  0x1a   :  { %89 = vmatpush.msra.mxu0 %v74_v11 }
  0x1b   :  { %127 = vmatpush.msra.mxu1 %v114_v12 }
  0x1c   :  { %90 = vmatpush.msra.mxu0 %v73_v13 }
  0x1d   :  { %128 = vmatpush.msra.mxu1 %v113_v14 }
  0x1e   :  { %91 = vmatpush.msra.mxu0 %v72_v15 }
  0x1f   :  { %129 = vmatpush.msra.mxu1 %v112_v16 }
  0x20   :  { %92 = vmatpush.msra.mxu0 %v71_v17 }
  0x21   :  { %130 = vmatpush.msra.mxu1 %v111_v18 }
  0x22   :  { %93 = vmatpush.msra.mxu0 %v70_v19 }
  0x23   :  { %131 = vmatpush.msra.mxu1 %v110_v20 }
  0x24   :  { %94 = vmatpush.msra.mxu0 %v69_v21 }
  0x25   :  { %132 = vmatpush.msra.mxu1 %v109_v22 }
  0x26   :  { %95 = vmatpush.msra.mxu0 %v68_v23 }
  0x27   :  { %133 = vmatpush.msra.mxu1 %v108_v24 }
  0x28   :  { %96 = vmatpush.msra.mxu0 %v67_v25 }
  0x29   :  { %134 = vmatpush.msra.mxu1 %v107_v26 }
  0x2a   :  { %97 = vmatpush.msra.mxu0 %v66_v27 }
  0x2b   :  { %135 = vmatpush.msra.mxu1 %v106_v29 }
  0x2c   :  { %98 = vmatpush.msra.mxu0 %v65_v30 }
  0x2d   :  { %136 = vmatpush.msra.mxu1 %v105_v31 }
  0x2e   :  { %99 = vmatpush.msra.mxu0 %v64_v33  ;;  %137 = vmatmul.f32.vlgmr.msra.gmra.mxu1 %v104_v32 }
  0x2f   :  { %100 = vmatmul.f32.vlgmr.msra.gmra.mxu0 %v63_v28 }
  0xab   :  { %v138_v35 = vpop.f32.mrf.mxu1 }
  0xac   :  { %v101_v36 = vpop.f32.mrf.mxu0  ;;  %v141_v37 = vmul.f32 0.2, %v138_v35 }
  0xad   :  { %v102_v38 = vadd.f32 %v169_v34, %v101_v36 }
  0xae   :  { %v142_v39 = vsub.f32 1.0, %v141_v37 }
  0xb0   :  { %v143_v40 = vmul.f32 %v142_v39, %v102_v38 }
  0xb2   :  { %144 = vst [vmem:[#allocation8] sm:$0xff] %v143_v40 }
  0xb3   :  { %155 = dma.vmem_to_hbm [thread:$0]  %s151_s6, 128, %s153_s9, [#allocation4]  }
  0xb4   :  { %270 = dma.done.wait [#allocation4], 128  }
  0xb5   :  { %271 = vsyncadd [#allocation4], 4294967168 }
  0xb6   :  { %160 = vsyncpa [#allocation3], 1 }
  0xb7   :  { %161 = vsyncpa [#allocation6], 1 }
  0xb8   :  { %162 = vsyncpa [#allocation4], 1 }

</bundles_post_ra>
